<compile_context>
chip_gen: v7x
topology: tpu7x:2x2x1
jax: 0.10.0
libtpu: 0.0.40
codegen_flags: <defaults>
</compile_context>

<pallas_src>
import functools

import jax
import jax.numpy as jnp
from jax.experimental import pallas as pl
from jax.experimental.pallas import tpu as pltpu


def _round_up(x, m):
    return ((x + m - 1) // m) * m


def classifier_kernel(x_ref, wt_ref, b_ref, logits_ref, probs_ref):
    # x: (TB, K) f32, wt: (K, 2) f32 (pre-transposed in wrapper), b: (1, 2) f32
    logits = (
        jnp.dot(x_ref[...], wt_ref[...], preferred_element_type=jnp.float32)
        + b_ref[...]
    )
    logits_ref[...] = logits.astype(logits_ref.dtype)

    # softmax over the 2 classes == sigmoid of the logit difference:
    #   p1 = 1 / (1 + exp(l0 - l1)),  p0 = 1 - p1   (exact for 2 classes)
    # Pure elementwise VPU/EUP work: no cross-lane max/sum at 2/128 utilization.
    l0 = logits[:, 0:1]
    l1 = logits[:, 1:2]
    p1 = pl.reciprocal(1.0 + jnp.exp(l0 - l1), approx=True)  # EUP exp + vrcp
    p0 = 1.0 - p1
    col = jax.lax.broadcasted_iota(jnp.int32, logits.shape, 1)  # (TB, 2): [0, 1]
    probs = jnp.where(col == 0, p0, p1)  # lane-broadcast (TB,1) cols -> (TB,2)
    probs_ref[...] = probs.astype(probs_ref.dtype)


def _pick_batch_tile(B, K, itemsize):
    # Keep 2x (double-buffered) x tiles comfortably inside the default scoped
    # VMEM on every generation (v5e 16 MiB, v6e/v7x 32 MiB): ~8 MiB budget.
    budget = 8 * 1024 * 1024
    tb = budget // max(1, 2 * K * itemsize)
    tb = max(8, min(512, (tb // 8) * 8))
    return min(tb, _round_up(B, 8))


@jax.jit
def classifier_forward(x, w, b):
    """x: (B, K) f32, w: (2, K) f32 (PyTorch layout), b: (2,) f32 -> (logits, probs)."""
    B, K = x.shape
    wt = w.T                  # (K, 2): hoist the transpose out of the kernel
    b2d = b.reshape(1, 2)

    TB = _pick_batch_tile(B, K, x.dtype.itemsize)
    Bp = _round_up(B, TB)
    if Bp != B:
        x = jnp.pad(x, ((0, Bp - B), (0, 0)))

    grid = (Bp // TB,)
    out_shapes = (
        jax.ShapeDtypeStruct((Bp, 2), x.dtype),
        jax.ShapeDtypeStruct((Bp, 2), x.dtype),
    )
    # NOTE: outputs are only 2 lanes wide -> masked stores; acceptable since x
    # traffic dominates.  For very small K a class-major (2, B) layout would be
    # lane-dense, but the consumer expects PyTorch's (B, 2).
    # TODO(synk): for n_inputs >~ 8K add a K grid axis with a (TB, 2) scratch
    # accumulator so x tiles stay bounded in VMEM.
    logits, probs = pl.pallas_call(
        classifier_kernel,
        out_shape=out_shapes,
        grid=grid,
        in_specs=[
            pl.BlockSpec((TB, K), lambda i: (i, 0)),   # streamed, double-buffered
            pl.BlockSpec((K, 2), lambda i: (0, 0)),    # resident weight
            pl.BlockSpec((1, 2), lambda i: (0, 0)),    # resident bias
        ],
        out_specs=(
            pl.BlockSpec((TB, 2), lambda i: (i, 0)),
            pl.BlockSpec((TB, 2), lambda i: (i, 0)),
        ),
        compiler_params=pltpu.CompilerParams(
            dimension_semantics=("parallel",),         # megacore batch split (v7x)
        ),
    )(x, wt, b2d)

    if Bp != B:
        logits = logits[:B]
        probs = probs[:B]
    return logits, probs


if __name__ == "__main__":
    key = jax.random.PRNGKey(0)
    k_x, k_w, k_b = jax.random.split(key, 3)

    batch = 8
    n_inputs = 32

    # Deterministic parameter init mirroring nn.Linear's U(-1/sqrt(fan_in), ...)
    bound = 1.0 / (n_inputs ** 0.5)
    w = jax.random.uniform(k_w, (2, n_inputs), jnp.float32, minval=-bound, maxval=bound)
    b = jax.random.uniform(k_b, (2,), jnp.float32, minval=-bound, maxval=bound)
    x = jax.random.normal(k_x, (batch, n_inputs), jnp.float32)

    logits, probs = classifier_forward(x, w, b)
    jax.block_until_ready((logits, probs))

    # Reference check in plain JAX
    ref_logits = x @ w.T + b
    ref_probs = jax.nn.softmax(ref_logits, axis=1)
    assert logits.shape == (batch, 2) and probs.shape == (batch, 2)
    assert jnp.allclose(logits, ref_logits, atol=1e-5, rtol=1e-5)
    # approx reciprocal in the 2-class softmax -> allow ~1e-3 slack on probs
    assert jnp.allclose(probs, ref_probs, atol=2e-3, rtol=2e-3)

    print("KERNEL_OK")
</pallas_src>

<mosaic_0001>
module attributes {stable_mosaic.version = 11 : i64} {
  func.func @classifier_kernel(%arg0: i32, %arg1: memref<8x32xf32, #tpu.memory_space<vmem>>, %arg2: memref<32x2xf32, #tpu.memory_space<vmem>>, %arg3: memref<1x2xf32, #tpu.memory_space<vmem>>, %arg4: memref<8x2xf32, #tpu.memory_space<vmem>>, %arg5: memref<8x2xf32, #tpu.memory_space<vmem>>) attributes {dimension_semantics = [#tpu.dimension_semantics<parallel>], iteration_bounds = array<i64: 1>, scalar_prefetch = 0 : i64, scratch_operands = 0 : i64, tpu.core_type = #tpu.core_type<tc>, window_params = [{transform_indices = @transform_0, window_bounds = array<i64: 8, 32>}, {pipeline_mode = #tpu.pipeline_mode<synchronous>, transform_indices = @transform_1, window_bounds = array<i64: 32, 2>}, {pipeline_mode = #tpu.pipeline_mode<synchronous>, transform_indices = @transform_2, window_bounds = array<i64: 1, 2>}, {transform_indices = @transform_3, window_bounds = array<i64: 8, 2>}, {transform_indices = @transform_4, window_bounds = array<i64: 8, 2>}]} {
    %c0 = arith.constant 0 : index
    %c0_0 = arith.constant 0 : index
    %0 = vector.load %arg1[%c0, %c0_0] : memref<8x32xf32, #tpu.memory_space<vmem>>, vector<8x32xf32>
    %c0_1 = arith.constant 0 : index
    %c0_2 = arith.constant 0 : index
    %1 = vector.load %arg2[%c0_1, %c0_2] : memref<32x2xf32, #tpu.memory_space<vmem>>, vector<32x2xf32>
    %cst = arith.constant dense<0.000000e+00> : vector<8x2xf32>
    %2 = tpu.matmul %0, %1, %cst {dimension_numbers = #tpu.dot_dimension_numbers<[1], [0], [0], [1], [0, 0, 1, 1], [], []>} : vector<8x32xf32>, vector<32x2xf32>, vector<8x2xf32> -> vector<8x2xf32>
    %c0_3 = arith.constant 0 : index
    %c0_4 = arith.constant 0 : index
    %3 = vector.load %arg3[%c0_3, %c0_4] : memref<1x2xf32, #tpu.memory_space<vmem>>, vector<1x2xf32>
    %4 = vector.broadcast %3 : vector<1x2xf32> to vector<8x2xf32>
    %5 = arith.addf %2, %4 : vector<8x2xf32>
    %c0_5 = arith.constant 0 : index
    %c0_6 = arith.constant 0 : index
    %6 = vector.load %arg4[%c0_5, %c0_6] : memref<8x2xf32, #tpu.memory_space<vmem>>, vector<8x2xf32>
    tpu.vector_store %arg4[%c0_5, %c0_6], %5 {strides = array<i32>} : memref<8x2xf32, #tpu.memory_space<vmem>>, vector<8x2xf32>,
    %7 = vector.extract_strided_slice %5 {offsets = [0, 0], sizes = [8, 1], strides = [1, 1]} : vector<8x2xf32> to vector<8x1xf32>
    %8 = vector.extract_strided_slice %5 {offsets = [0, 1], sizes = [8, 1], strides = [1, 1]} : vector<8x2xf32> to vector<8x1xf32>
    %9 = arith.subf %7, %8 : vector<8x1xf32>
    %10 = math.exp %9 : vector<8x1xf32>
    %cst_7 = arith.constant 1.000000e+00 : f32
    %11 = vector.broadcast %cst_7 : f32 to vector<8x1xf32>
    %12 = arith.addf %11, %10 : vector<8x1xf32>
    %13 = tpu.reciprocal %12 {approx = true} : vector<8x1xf32> -> vector<8x1xf32>
    %cst_8 = arith.constant 1.000000e+00 : f32
    %14 = vector.broadcast %cst_8 : f32 to vector<8x1xf32>
    %15 = arith.subf %14, %13 : vector<8x1xf32>
    %16 = tpu.iota {dimensions = array<i32: 1>} : vector<8x2xi32>
    %c0_i32 = arith.constant 0 : i32
    %17 = vector.broadcast %c0_i32 : i32 to vector<8x2xi32>
    %18 = arith.cmpi eq, %16, %17 : vector<8x2xi32>
    %19 = vector.shape_cast %15 : vector<8x1xf32> to vector<8x1xf32>
    %20 = vector.broadcast %19 : vector<8x1xf32> to vector<8x2xf32>
    %21 = vector.shape_cast %13 : vector<8x1xf32> to vector<8x1xf32>
    %22 = vector.broadcast %21 : vector<8x1xf32> to vector<8x2xf32>
    %23 = arith.select %18, %20, %22 : vector<8x2xi1>, vector<8x2xf32>
    %c0_9 = arith.constant 0 : index
    %c0_10 = arith.constant 0 : index
    %24 = vector.load %arg5[%c0_9, %c0_10] : memref<8x2xf32, #tpu.memory_space<vmem>>, vector<8x2xf32>
    tpu.vector_store %arg5[%c0_9, %c0_10], %23 {strides = array<i32>} : memref<8x2xf32, #tpu.memory_space<vmem>>, vector<8x2xf32>,
    return
  }
  func.func @transform_0(%arg0: i32) -> (i32, i32) {
    %c0_i32 = arith.constant 0 : i32
    %c0_i32_0 = arith.constant 0 : i32
    return %arg0, %c0_i32 : i32, i32
  }
  func.func @transform_1(%arg0: i32) -> (i32, i32) {
    %c0_i32 = arith.constant 0 : i32
    %c0_i32_0 = arith.constant 0 : i32
    %c0_i32_1 = arith.constant 0 : i32
    return %c0_i32, %c0_i32_0 : i32, i32
  }
  func.func @transform_2(%arg0: i32) -> (i32, i32) {
    %c0_i32 = arith.constant 0 : i32
    %c0_i32_0 = arith.constant 0 : i32
    %c0_i32_1 = arith.constant 0 : i32
    return %c0_i32, %c0_i32_0 : i32, i32
  }
  func.func @transform_3(%arg0: i32) -> (i32, i32) {
    %c0_i32 = arith.constant 0 : i32
    %c0_i32_0 = arith.constant 0 : i32
    return %arg0, %c0_i32 : i32, i32
  }
  func.func @transform_4(%arg0: i32) -> (i32, i32) {
    %c0_i32 = arith.constant 0 : i32
    %c0_i32_0 = arith.constant 0 : i32
    return %arg0, %c0_i32 : i32, i32
  }
}

</mosaic_0001>

<bundles_post_ra>
// kernel: classifier_forward.1
= control target key start
LH: loop header
LB: loop body
LE: loop exit
PB: predicated region body
PF: predicated region fallthrough
CT: control target
= control target key end

     0   :  { %v172_v0 = vmov 0.0|0.0   ;;  %vm173_vm0 = vmmov 0   ;;  %v174_v4 = vmov 0.0   ;;  %vm28_vm1 = vcmask 261120   ;;  %s175_s28 = smov 127   ;;  %s228_s1 = inlined_call_operand.vmem [shape: f32[32,2], index: 1, kind: input, shape index: {}]   ;;  %s229_s0 = inlined_call_operand.vmem [shape: f32[8,32], index: 0, kind: input, shape index: {}]   ;;  %s230_s2 = inlined_call_operand.vmem [shape: f32[1,2], index: 2, kind: input, shape index: {}]   ;;  %s231_s3 = inlined_call_operand.vmem [shape: f32[8,2], index: 3, kind: output, shape index: {0}]   ;;  %s232_s4 = inlined_call_operand.vmem [shape: f32[8,2], index: 4, kind: output, shape index: {1}]  }
   0x1   :  { %155 = vmatprep.subr.bf16.mxu0 %v172_v0  ;;  %v17_v1 = vld [vmem:[%s228_s1] sm:$0xff]  ;;  %v18_v2 = vld [vmem:[%s228_s1 + $0x8] sm:$0xff]  ;;  %v19_v3 = vld [vmem:[%s228_s1 + $0x10] sm:$0xff]  ;;  %152 = vmatprep.mubr.msk.f32.mxu0 %vm173_vm0, %v174_v4  ;;  %vm102_vm2 = vcmask 15360   ;;  %v176_v13 = vmov 0   ;;  %v114_v21 = vlaneseq }
   0x2   :  { %v156_v5 = vpack.c.bf16 %v18_v2, %v17_v1  ;;  %v20_v6 = vld [vmem:[%s228_s1 + $0x18] sm:$0xff]  ;;  %v16_v8 = vld [vmem:[%s229_s0] sm:$0xff]  ;;  %167 = vset.pattern.permute.xlu1 %v176_v13  ;;  %166 = vset.pattern.permute.xlu0 %v176_v13 }
   0x3   :  { %v159_v7 = vpack.c.bf16 %v20_v6, %v19_v3  ;;  %v137_v9 = vld [vmem:[%s230_s2] ss:$0 sm:$0xff]  ;;  %v115_v22 = vand.u32 127, %v114_v21 }
   0x4   :  { %157 = vmatpush3.bf16.msra.mxu0 %v156_v5 }
   0x5   :  { %158 = vmatprep.subr.bf16.mxu0 %v172_v0  ;;  %vm116_vm3 = vcmp.eq.s32.totalorder %v115_v22, 0 }
   0x8   :  { %160 = vmatpush3.bf16.msra.mxu0 %v159_v7 }
   0xb   :  { %153 = vmatmul.mubr.msk.f32.vlgmr.msra.gmra.mrb[0].mxu0 %vm28_vm1, %v16_v8 }
  0xde   :  { %v98_v10 = vpop.f32.mrb[0].mxu0 }
  0xdf   :  { %v99_v11 = vadd.f32 %v137_v9, %v98_v10  ;;  %v154_v12 = vpop.f32.mrb[1].mxu0 }
  0xe1   :  { %103 = vst.msk [vmem:[%s231_s3] sm:$0xff] %vm102_vm2, %v99_v11  ;;  %105 = vrot.lane.b32.xlu0 %v99_v11, %s175_s28 }
 0x153   :  { %v106_v14 = vpop.permute.xlu0 %105 }
 0x154   :  { %v108_v15 = vsub.f32 %v99_v11, %v106_v14 }
 0x156   :  { %v109_v16 = vmul.f32 1.442695, %v108_v15 }
 0x158   :  { %168 = vpow2.f32 %v109_v16 }
 0x162   :  { %v169_v17 = vpop.eup %168 }
 0x163   :  { %v111_v18 = vadd.f32 1.0, %v169_v17 }
 0x165   :  { %170 = vrcp.f32 %v111_v18 }
 0x16f   :  { %v171_v19 = vpop.eup %170 }
 0x170   :  { %124 = vperm.xlu1 %167, %v171_v19   ;;  %v113_v20 = vsub.f32 1.0, %v171_v19 }
 0x172   :  { %119 = vperm.xlu0 %166, %v113_v20  }
 0x1ef   :  { %v125_v23 = vpop.permute.xlu1 %124 }
 0x1f1   :  { %v120_v24 = vpop.permute.xlu0 %119 }
 0x1f2   :  { %v127_v25 = vsel %vm116_vm3, %v120_v24, %v125_v23 }
 0x1f3   :  { %128 = vst.msk [vmem:[%s232_s4] sm:$0xff] %vm102_vm2, %v127_v25 }

</bundles_post_ra>
